<compile_context>
chip_gen: v7x
topology: tpu7x:2x2x1
jax: 0.10.0
libtpu: 0.0.40
codegen_flags: <defaults>
</compile_context>

<pallas_src>
import functools

import jax
import jax.numpy as jnp
from jax.experimental import pallas as pl
from jax.experimental.pallas import tpu as pltpu  # noqa: F401  (TPU backend)

BN_EPS = 1e-5
LANE = 128
NEG_BIG = -1e30          # logit filler for padded action columns -> softmax prob 0


def _round_up(n, m):
    return ((n + m - 1) // m) * m


def _full_spec(shape):
    # whole-array block resident in VMEM (all shapes here are tiny)
    return pl.BlockSpec(shape, lambda: (0,) * len(shape))


def _policy_kernel(x_ref, w1_ref, w23_ref, vec_ref, out_ref, *, hp, ap):
    """Single fused forward pass; everything resident in VMEM."""
    B = x_ref.shape[0]
    inv_n = 1.0 / B

    def bn_relu(h, gamma, beta):
        # one-pass batch stats (biased variance, matching training-mode BatchNorm1d)
        mu = jnp.sum(h, axis=0, keepdims=True) * inv_n
        ex2 = jnp.sum(h * h, axis=0, keepdims=True) * inv_n
        var = jnp.maximum(ex2 - mu * mu, 0.0)               # guard f32 cancellation
        scale = gamma * jax.lax.rsqrt(var + BN_EPS)          # rsqrt -> EUP slot
        shift = beta - mu * scale
        # relu'd activations cast to bf16 to keep the next matmul on the bf16 MXU path
        return jnp.maximum(h * scale + shift, 0.0).astype(jnp.bfloat16)

    # static, lane-aligned slices of the packed weight buffer (free)
    w2 = w23_ref[:, 0:hp]
    w3 = w23_ref[:, hp:hp + ap]

    # fc1 / fc2 biases omitted: exactly cancelled by the BN mean subtraction.
    h = jnp.dot(x_ref[...], w1_ref[...], preferred_element_type=jnp.float32)
    h = bn_relu(h, vec_ref[0:1, :hp], vec_ref[1:2, :hp])

    h = jnp.dot(h, w2, preferred_element_type=jnp.float32)
    h = bn_relu(h, vec_ref[2:3, :hp], vec_ref[3:4, :hp])

    logits = jnp.dot(h, w3, preferred_element_type=jnp.float32) + vec_ref[4:5, :ap]
    m = jnp.max(logits, axis=1, keepdims=True)
    e = jnp.exp(logits - m)
    out_ref[...] = e / jnp.sum(e, axis=1, keepdims=True)    # exact divide, (B,1) denom


def pack_params(params, state_size, hidden_size, action_size):
    """Pad weights only on their output/lane dims, cast matmul operands to bf16,
    pack W2|W3 into one buffer and the tiny per-feature vectors into one (8, wp) tile.

    Invariants relied on by the kernel:
      * padded hidden columns have gamma = beta = 0  -> exactly 0 after BN + relu
      * padded action columns have bias NEG_BIG      -> softmax probability exactly 0
    """
    w1, b1, g1, be1, w2, b2, g2, be2, w3, b3 = params
    del b1, b2  # cancelled by batch-stats BN (training path)
    hp = _round_up(hidden_size, LANE)
    ap = _round_up(action_size, LANE)
    wp = max(hp, ap)

    w1p = jnp.zeros((state_size, hp), jnp.float32).at[:, :hidden_size].set(w1)
    w1p = w1p.astype(jnp.bfloat16)

    w23p = jnp.zeros((hp, hp + ap), jnp.float32)
    w23p = w23p.at[:hidden_size, :hidden_size].set(w2)
    w23p = w23p.at[:hidden_size, hp:hp + action_size].set(w3)
    w23p = w23p.astype(jnp.bfloat16)

    vecs = jnp.zeros((8, wp), jnp.float32)
    vecs = vecs.at[0, :hidden_size].set(g1.reshape(-1))
    vecs = vecs.at[1, :hidden_size].set(be1.reshape(-1))
    vecs = vecs.at[2, :hidden_size].set(g2.reshape(-1))
    vecs = vecs.at[3, :hidden_size].set(be2.reshape(-1))
    vecs = vecs.at[4, :].set(jnp.full((wp,), NEG_BIG, jnp.float32))
    vecs = vecs.at[4, :action_size].set(b3.reshape(-1))

    packed = (w1p, w23p, vecs)
    meta = (hp, ap, state_size, action_size)
    return packed, meta


def policy_forward(x, packed, meta):
    """x: (B, state_size) or (state_size,) float32. Returns (B, action_size) softmax probs."""
    if x.ndim == 1:                       # mirrors `if x.dim() == 1: x = x.unsqueeze(0)`
        x = x[None, :]
    hp, ap, state_size, action_size = meta
    w1p, w23p, vecs = packed
    B = x.shape[0]
    assert x.shape[1] == state_size
    assert B > 1, "BatchNorm training path requires batch size > 1 (as in the PyTorch module)"

    xb = x.astype(jnp.bfloat16)           # only per-call host-side op: dtype cast (no padding)

    kernel = functools.partial(_policy_kernel, hp=hp, ap=ap)
    args = (xb, w1p, w23p, vecs)
    out = pl.pallas_call(
        kernel,
        out_shape=jax.ShapeDtypeStruct((B, ap), jnp.float32),
        in_specs=[_full_spec(a.shape) for a in args],
        out_specs=_full_spec((B, ap)),
    )(*args)
    return out[:, :action_size]           # drop the lane padding (padded probs are 0)


def init_params(key, state_size, action_size, hidden_size):
    """Deterministic init matching the PyTorch module's shapes / init schemes (f32 masters)."""
    ks = jax.random.split(key, 6)

    def kaiming(k, fan_in, fan_out):                       # kaiming_normal_, relu gain
        std = jnp.sqrt(2.0 / fan_in)
        return jax.random.normal(k, (fan_in, fan_out), jnp.float32) * std  # stored (in, out)

    def bias(k, fan_in, fan_out):                          # default nn.Linear bias init
        bound = 1.0 / jnp.sqrt(fan_in)
        return jax.random.uniform(k, (1, fan_out), jnp.float32, -bound, bound)

    w1 = kaiming(ks[0], state_size, hidden_size)
    b1 = bias(ks[1], state_size, hidden_size)
    w2 = kaiming(ks[2], hidden_size, hidden_size)
    b2 = bias(ks[3], hidden_size, hidden_size)

    bound3 = jnp.sqrt(6.0 / (hidden_size + action_size))   # xavier_uniform_
    w3 = jax.random.uniform(ks[4], (hidden_size, action_size), jnp.float32, -bound3, bound3)
    b3 = bias(ks[5], hidden_size, action_size)

    g1 = jnp.ones((1, hidden_size), jnp.float32)
    be1 = jnp.zeros((1, hidden_size), jnp.float32)
    g2 = jnp.ones((1, hidden_size), jnp.float32)
    be2 = jnp.zeros((1, hidden_size), jnp.float32)
    return (w1, b1, g1, be1, w2, b2, g2, be2, w3, b3)


def reference_forward(x, params, matmul_dtype=jnp.float32):
    """Pure-JAX reference with the original (un-folded, biased, two-pass-var) math.

    matmul_dtype=bfloat16 rounds the matmul operands the same way the MXU does
    (bf16 operands, f32 accumulation) for a tight numerical comparison."""
    w1, b1, g1, be1, w2, b2, g2, be2, w3, b3 = params
    hi = jax.lax.Precision.HIGHEST
    cast = lambda a: a.astype(matmul_dtype).astype(jnp.float32)

    def bn(h, g, be):
        mu = jnp.mean(h, axis=0, keepdims=True)
        var = jnp.mean((h - mu) ** 2, axis=0, keepdims=True)
        return (h - mu) * jax.lax.rsqrt(var + BN_EPS) * g + be

    h = jnp.maximum(bn(jnp.dot(cast(x), cast(w1), precision=hi) + b1, g1, be1), 0.0)
    h = jnp.maximum(bn(jnp.dot(cast(h), cast(w2), precision=hi) + b2, g2, be2), 0.0)
    return jax.nn.softmax(jnp.dot(cast(h), cast(w3), precision=hi) + b3, axis=1)


if __name__ == "__main__":
    state_size, action_size, hidden_size, batch = 8, 4, 32, 8

    key = jax.random.PRNGKey(0)
    pkey, xkey = jax.random.split(key)
    params = init_params(pkey, state_size, action_size, hidden_size)
    packed, meta = pack_params(params, state_size, hidden_size, action_size)
    x = jax.random.normal(xkey, (batch, state_size), jnp.float32)

    probs = policy_forward(x, packed, meta)
    probs = jax.block_until_ready(probs)

    # sanity: shape, row sums ~1 (exact divide), matches references
    assert probs.shape == (batch, action_size)
    assert bool(jnp.all(jnp.abs(jnp.sum(probs, axis=1) - 1.0) < 1e-5))
    ref_bf16 = reference_forward(x, params, jnp.bfloat16)   # same operand rounding as MXU
    ref_f32 = reference_forward(x, params, jnp.float32)     # original full-f32 semantics
    assert bool(jnp.all(jnp.abs(probs - ref_bf16) < 5e-3))
    assert bool(jnp.all(jnp.abs(probs - ref_f32) < 5e-2))
    print("KERNEL_OK")
</pallas_src>

<mosaic_0001>
module attributes {stable_mosaic.version = 11 : i64} {
  func.func @_policy_kernel(%arg0: memref<8x8xbf16, #tpu.memory_space<vmem>>, %arg1: memref<8x128xbf16, #tpu.memory_space<vmem>>, %arg2: memref<128x256xbf16, #tpu.memory_space<vmem>>, %arg3: memref<8x128xf32, #tpu.memory_space<vmem>>, %arg4: memref<8x128xf32, #tpu.memory_space<vmem>>) attributes {dimension_semantics = [], scalar_prefetch = 0 : i64, scratch_operands = 0 : i64, tpu.core_type = #tpu.core_type<tc>} {
    %c0 = arith.constant 0 : index
    %c0_0 = arith.constant 0 : index
    %0 = vector.load %arg2[%c0, %c0_0] : memref<128x256xbf16, #tpu.memory_space<vmem>>, vector<128x128xbf16>
    %c0_1 = arith.constant 0 : index
    %c128 = arith.constant 128 : index
    %1 = vector.load %arg2[%c0_1, %c128] : memref<128x256xbf16, #tpu.memory_space<vmem>>, vector<128x128xbf16>
    %c0_2 = arith.constant 0 : index
    %c0_3 = arith.constant 0 : index
    %2 = vector.load %arg0[%c0_2, %c0_3] : memref<8x8xbf16, #tpu.memory_space<vmem>>, vector<8x8xbf16>
    %c0_4 = arith.constant 0 : index
    %c0_5 = arith.constant 0 : index
    %3 = vector.load %arg1[%c0_4, %c0_5] : memref<8x128xbf16, #tpu.memory_space<vmem>>, vector<8x128xbf16>
    %cst = arith.constant dense<0.000000e+00> : vector<8x128xf32>
    %4 = tpu.matmul %2, %3, %cst {dimension_numbers = #tpu.dot_dimension_numbers<[1], [0], [0], [1], [0, 0, 1, 1], [], []>} : vector<8x8xbf16>, vector<8x128xbf16>, vector<8x128xf32> -> vector<8x128xf32>
    %c0_6 = arith.constant 0 : index
    %c0_7 = arith.constant 0 : index
    %5 = vector.load %arg3[%c0_6, %c0_7] : memref<8x128xf32, #tpu.memory_space<vmem>>, vector<1x128xf32>
    %c1 = arith.constant 1 : index
    %c0_8 = arith.constant 0 : index
    %6 = vector.load %arg3[%c1, %c0_8] : memref<8x128xf32, #tpu.memory_space<vmem>>, vector<1x128xf32>
    %cst_9 = arith.constant dense<0.000000e+00> : vector<128xf32>
    %7 = vector.multi_reduction <add>, %4, %cst_9 [0] : vector<8x128xf32> to vector<128xf32>
    %8 = vector.shape_cast %7 : vector<128xf32> to vector<1x128xf32>
    %cst_10 = arith.constant 1.250000e-01 : f32
    %9 = vector.broadcast %cst_10 : f32 to vector<1x128xf32>
    %10 = arith.mulf %8, %9 : vector<1x128xf32>
    %11 = arith.mulf %4, %4 : vector<8x128xf32>
    %cst_11 = arith.constant dense<0.000000e+00> : vector<128xf32>
    %12 = vector.multi_reduction <add>, %11, %cst_11 [0] : vector<8x128xf32> to vector<128xf32>
    %13 = vector.shape_cast %12 : vector<128xf32> to vector<1x128xf32>
    %cst_12 = arith.constant 1.250000e-01 : f32
    %14 = vector.broadcast %cst_12 : f32 to vector<1x128xf32>
    %15 = arith.mulf %13, %14 : vector<1x128xf32>
    %16 = arith.mulf %10, %10 : vector<1x128xf32>
    %17 = arith.subf %15, %16 : vector<1x128xf32>
    %cst_13 = arith.constant 0.000000e+00 : f32
    %18 = vector.broadcast %cst_13 : f32 to vector<1x128xf32>
    %19 = arith.maximumf %17, %18 : vector<1x128xf32>
    %cst_14 = arith.constant 9.99999974E-6 : f32
    %20 = vector.broadcast %cst_14 : f32 to vector<1x128xf32>
    %21 = arith.addf %19, %20 : vector<1x128xf32>
    %22 = math.rsqrt %21 : vector<1x128xf32>
    %23 = arith.mulf %5, %22 : vector<1x128xf32>
    %24 = arith.mulf %10, %23 : vector<1x128xf32>
    %25 = arith.subf %6, %24 : vector<1x128xf32>
    %26 = vector.broadcast %23 : vector<1x128xf32> to vector<8x128xf32>
    %27 = arith.mulf %4, %26 : vector<8x128xf32>
    %28 = vector.broadcast %25 : vector<1x128xf32> to vector<8x128xf32>
    %29 = arith.addf %27, %28 : vector<8x128xf32>
    %cst_15 = arith.constant 0.000000e+00 : f32
    %30 = vector.broadcast %cst_15 : f32 to vector<8x128xf32>
    %31 = arith.maximumf %29, %30 : vector<8x128xf32>
    %32 = arith.truncf %31 : vector<8x128xf32> to vector<8x128xbf16>
    %cst_16 = arith.constant dense<0.000000e+00> : vector<8x128xf32>
    %33 = tpu.matmul %32, %0, %cst_16 {dimension_numbers = #tpu.dot_dimension_numbers<[1], [0], [0], [1], [0, 0, 1, 1], [], []>} : vector<8x128xbf16>, vector<128x128xbf16>, vector<8x128xf32> -> vector<8x128xf32>
    %c2 = arith.constant 2 : index
    %c0_17 = arith.constant 0 : index
    %34 = vector.load %arg3[%c2, %c0_17] : memref<8x128xf32, #tpu.memory_space<vmem>>, vector<1x128xf32>
    %c3 = arith.constant 3 : index
    %c0_18 = arith.constant 0 : index
    %35 = vector.load %arg3[%c3, %c0_18] : memref<8x128xf32, #tpu.memory_space<vmem>>, vector<1x128xf32>
    %cst_19 = arith.constant dense<0.000000e+00> : vector<128xf32>
    %36 = vector.multi_reduction <add>, %33, %cst_19 [0] : vector<8x128xf32> to vector<128xf32>
    %37 = vector.shape_cast %36 : vector<128xf32> to vector<1x128xf32>
    %cst_20 = arith.constant 1.250000e-01 : f32
    %38 = vector.broadcast %cst_20 : f32 to vector<1x128xf32>
    %39 = arith.mulf %37, %38 : vector<1x128xf32>
    %40 = arith.mulf %33, %33 : vector<8x128xf32>
    %cst_21 = arith.constant dense<0.000000e+00> : vector<128xf32>
    %41 = vector.multi_reduction <add>, %40, %cst_21 [0] : vector<8x128xf32> to vector<128xf32>
    %42 = vector.shape_cast %41 : vector<128xf32> to vector<1x128xf32>
    %cst_22 = arith.constant 1.250000e-01 : f32
    %43 = vector.broadcast %cst_22 : f32 to vector<1x128xf32>
    %44 = arith.mulf %42, %43 : vector<1x128xf32>
    %45 = arith.mulf %39, %39 : vector<1x128xf32>
    %46 = arith.subf %44, %45 : vector<1x128xf32>
    %cst_23 = arith.constant 0.000000e+00 : f32
    %47 = vector.broadcast %cst_23 : f32 to vector<1x128xf32>
    %48 = arith.maximumf %46, %47 : vector<1x128xf32>
    %cst_24 = arith.constant 9.99999974E-6 : f32
    %49 = vector.broadcast %cst_24 : f32 to vector<1x128xf32>
    %50 = arith.addf %48, %49 : vector<1x128xf32>
    %51 = math.rsqrt %50 : vector<1x128xf32>
    %52 = arith.mulf %34, %51 : vector<1x128xf32>
    %53 = arith.mulf %39, %52 : vector<1x128xf32>
    %54 = arith.subf %35, %53 : vector<1x128xf32>
    %55 = vector.broadcast %52 : vector<1x128xf32> to vector<8x128xf32>
    %56 = arith.mulf %33, %55 : vector<8x128xf32>
    %57 = vector.broadcast %54 : vector<1x128xf32> to vector<8x128xf32>
    %58 = arith.addf %56, %57 : vector<8x128xf32>
    %cst_25 = arith.constant 0.000000e+00 : f32
    %59 = vector.broadcast %cst_25 : f32 to vector<8x128xf32>
    %60 = arith.maximumf %58, %59 : vector<8x128xf32>
    %61 = arith.truncf %60 : vector<8x128xf32> to vector<8x128xbf16>
    %cst_26 = arith.constant dense<0.000000e+00> : vector<8x128xf32>
    %62 = tpu.matmul %61, %1, %cst_26 {dimension_numbers = #tpu.dot_dimension_numbers<[1], [0], [0], [1], [0, 0, 1, 1], [], []>} : vector<8x128xbf16>, vector<128x128xbf16>, vector<8x128xf32> -> vector<8x128xf32>
    %c4 = arith.constant 4 : index
    %c0_27 = arith.constant 0 : index
    %63 = vector.load %arg3[%c4, %c0_27] : memref<8x128xf32, #tpu.memory_space<vmem>>, vector<1x128xf32>
    %64 = vector.broadcast %63 : vector<1x128xf32> to vector<8x128xf32>
    %65 = arith.addf %62, %64 : vector<8x128xf32>
    %cst_28 = arith.constant dense<0xFF800000> : vector<8xf32>
    %66 = vector.multi_reduction <maximumf>, %65, %cst_28 [1] : vector<8x128xf32> to vector<8xf32>
    %67 = vector.shape_cast %66 : vector<8xf32> to vector<8x1xf32>
    %68 = vector.broadcast %67 : vector<8x1xf32> to vector<8x128xf32>
    %69 = arith.subf %65, %68 : vector<8x128xf32>
    %70 = math.exp %69 : vector<8x128xf32>
    %cst_29 = arith.constant dense<0.000000e+00> : vector<8xf32>
    %71 = vector.multi_reduction <add>, %70, %cst_29 [1] : vector<8x128xf32> to vector<8xf32>
    %72 = vector.shape_cast %71 : vector<8xf32> to vector<8x1xf32>
    %73 = vector.broadcast %72 : vector<8x1xf32> to vector<8x128xf32>
    %74 = arith.divf %70, %73 : vector<8x128xf32>
    %c0_30 = arith.constant 0 : index
    %c0_31 = arith.constant 0 : index
    %75 = vector.load %arg4[%c0_30, %c0_31] : memref<8x128xf32, #tpu.memory_space<vmem>>, vector<8x128xf32>
    tpu.vector_store %arg4[%c0_30, %c0_31], %74 {strides = array<i32>} : memref<8x128xf32, #tpu.memory_space<vmem>>, vector<8x128xf32>,
    return
  }
}

</mosaic_0001>

<bundles_post_ra>
// kernel: tpu_custom_call.1
= control target key start
LH: loop header
LB: loop body
LE: loop exit
PB: predicated region body
PF: predicated region fallthrough
CT: control target
= control target key end

     0   :  { %9 = vsyncpa [#allocation3], 0  ;;  %s751_s0 = inlined_call_operand.hbm [shape: bf16[8,8], index: 0, kind: input, shape index: {}]   ;;  %s752_s1 = inlined_call_operand.hbm [shape: bf16[8,128], index: 1, kind: input, shape index: {}]   ;;  %s753_s2 = inlined_call_operand.hbm [shape: bf16[128,256], index: 2, kind: input, shape index: {}]   ;;  %s754_s3 = inlined_call_operand.vmem [shape: f32[8,128], index: 3, kind: input, shape index: {}]   ;;  %s755_s4 = inlined_call_operand.hbm [shape: f32[8,128], index: 4, kind: output, shape index: {}]  }
   0x1   :  { %10 = vsyncpa [#allocation6], 0 }
   0x2   :  { %11 = vsyncpa [#allocation4], 0  ;;  %s629_s15 = smov [#allocation5]   ;;  %s630_s17 = smov [#allocation2]  }
   0x3   :  { %s28_s16 = sshll.u32 %s629_s15, 4  ;;  %s18_s18 = sshll.u32 %s630_s17, 4  ;;  %s29_s16 = int_to_ptr.vmem [resolvable:$true] %s28_s16  ;;  %s19_s18 = int_to_ptr.vmem [resolvable:$true] %s18_s18 }
   0x4   :  { %s535_s21 = scalar_lea.hbm %s752_s1, 64 }
   0x5   :  { %p536_p0 = scmp.ne.s32.totalorder %s752_s1, %s535_s21  ;;  %p539_p1 = scmp.lt.u32.totalorder %s535_s21, %s752_s1 }
   0x7   :  { %p541_p2 = pnand %p539_p1, %p536_p0 }
   0x9   :  { %544 = shalt.err (!%p541_p2)
}
   0xa   :  { %s545_s26 = scalar_lea.vmem %s29_s16, 64  ;;  %p550_p4 = scmp.lt.s32.totalorder %s29_s16, %s29_s16 }
   0xb   :  { %p546_p3 = scmp.ne.s32.totalorder %s29_s16, %s545_s26  ;;  %p551_p5 = scmp.lt.s32.totalorder %s545_s26, %s545_s26 }
   0xd   :  { %p552_p6 = por %p551_p5, %p550_p4 }
   0xf   :  { %p553_p7 = pnand %p552_p6, %p546_p3 }
  0x11   :  { %556 = shalt.err (!%p553_p7)
}
  0x12   :  { %31 = dma.hbm_to_vmem [thread:$0]  %s752_s1, 64, %s29_s16, [#allocation6]  }
  0x13   :  { %s557_s5 = scalar_lea.hbm %s751_s0, 64 }
  0x14   :  { %p558_p8 = scmp.ne.s32.totalorder %s751_s0, %s557_s5  ;;  %p561_p9 = scmp.lt.u32.totalorder %s557_s5, %s751_s0 }
  0x16   :  { %p563_p10 = pnand %p561_p9, %p558_p8 }
  0x18   :  { %566 = shalt.err (!%p563_p10)
}
  0x19   :  { %s567_s10 = scalar_lea.vmem %s19_s18, 64  ;;  %p572_p12 = scmp.lt.s32.totalorder %s19_s18, %s19_s18 }
  0x1a   :  { %p568_p11 = scmp.ne.s32.totalorder %s19_s18, %s567_s10  ;;  %p573_p13 = scmp.lt.s32.totalorder %s567_s10, %s567_s10 }
  0x1c   :  { %p574_p0 = por %p573_p13, %p572_p12 }
  0x1e   :  { %p575_p1 = pnand %p574_p0, %p568_p11 }
  0x20   :  { %578 = shalt.err (!%p575_p1)
}
  0x21   :  { %21 = dma.hbm_to_vmem [thread:$0]  %s751_s0, 64, %s19_s18, [#allocation3]  }
  0x22   :  { %s631_s12 = smov [#allocation7]   ;;  %s579_s16 = scalar_lea.hbm %s753_s2, 2048 }
  0x23   :  { %s37_s13 = sshll.u32 %s631_s12, 4  ;;  %p580_p2 = scmp.ne.s32.totalorder %s753_s2, %s579_s16  ;;  %s38_s13 = int_to_ptr.vmem [resolvable:$true] %s37_s13 }
  0x24   :  { %p583_p3 = scmp.lt.u32.totalorder %s579_s16, %s753_s2 }
  0x26   :  { %p585_p4 = pnand %p583_p3, %p580_p2 }
  0x28   :  { %588 = shalt.err (!%p585_p4)
}
  0x29   :  { %s589_s22 = scalar_lea.vmem %s38_s13, 2048  ;;  %p594_p6 = scmp.lt.s32.totalorder %s38_s13, %s38_s13 }
  0x2a   :  { %p590_p5 = scmp.ne.s32.totalorder %s38_s13, %s589_s22  ;;  %p595_p7 = scmp.lt.s32.totalorder %s589_s22, %s589_s22 }
  0x2c   :  { %p596_p8 = por %p595_p7, %p594_p6 }
  0x2e   :  { %p597_p9 = pnand %p596_p8, %p590_p5 }
  0x30   :  { %600 = shalt.err (!%p597_p9)
}
  0x31   :  { %s632_s0 = smov 128   ;;  %s633_s18 = smov 8  }
  0x32   :  { %43 = dma.hbm_to_vmem [thread:$0]  %s753_s2, 2048, %s38_s13, [#allocation6], %s632_s0, %s632_s0, %s633_s18  }
  0x33   :  { %623 = dma.done.wait [#allocation3], 64  }
  0x34   :  { %624 = vsyncadd [#allocation3], 4294967232 }
  0x35   :  { %625 = dma.done.wait [#allocation6], 2112  }
  0x36   :  { %626 = vsyncadd [#allocation6], 4294965184  ;;  %v634_v0 = vmov 0.0   ;;  %vm635_vm0 = vmmov 0   ;;  %vm94_vm1 = vcmask 1043456   ;;  %vm90_vm2 = vcmask 64512  }
  0x37   :  { %457 = vmatprep.subr.bf16.mxu0 %v634_v0  ;;  %459 = vmatprep.mubr.msk.bf16.mxu0 %vm635_vm0, %v634_v0  ;;  %v89_v1 = vld [vmem:[#allocation5] sm:$0xf]  ;;  %v88_v2 = vld [vmem:[#allocation2] sm:$0xf]  ;;  %v511_v4 = vld [vmem:[#allocation7] ss:$8 sps:$4 sm:$0xff]   ;;  %v163_v35 = vlaneseq }
  0x38   :  { %463 = vmatprep.subr.bf16.mxu1 %v634_v0  ;;  %479 = vmatprep.mubr.msk.bf16.mxu1 %vm635_vm0, %v634_v0  ;;  %v96_v3 = vsel %vm94_vm1, %v89_v1, 0  ;;  %v512_v5 = vld [vmem:[#allocation7 + $0x10] ss:$8 sps:$4 sm:$0xff]   ;;  %v513_v6 = vld [vmem:[#allocation7 + $0x20] ss:$8 sps:$4 sm:$0xff]   ;;  %s636_s8 = smov [#allocation8]  }
  0x39   :  { %458 = vmatpush3.bf16.msra.mxu0 %v96_v3  ;;  %464 = vmatpush3.bf16.msra.mxu1 %v511_v4  ;;  %v514_v7 = vld [vmem:[#allocation7 + $0x30] ss:$8 sps:$4 sm:$0xff]   ;;  %v515_v8 = vld [vmem:[#allocation7 + $0x40] ss:$8 sps:$4 sm:$0xff]   ;;  %v164_v36 = vshrl.u32 %v163_v35, 7  ;;  %s409_s9 = sshll.u32 %s636_s8, 4  ;;  %s410_s9 = int_to_ptr.vmem [resolvable:$true] %s409_s9 }
  0x3a   :  { %483 = vmatprep.subr.bf16.mxu0 %v634_v0  ;;  %465 = vmatprep.subr.bf16.mxu1 %v634_v0  ;;  %v516_v9 = vld [vmem:[#allocation7 + $0x50] ss:$8 sps:$4 sm:$0xff]   ;;  %v517_v10 = vld [vmem:[#allocation7 + $0x60] ss:$8 sps:$4 sm:$0xff]   ;;  %v519_v50 = vld [vmem:[#allocation7 + $0x4] ss:$8 sps:$4 sm:$0xff]   ;;  %p606_p11 = scmp.lt.s32.totalorder %s410_s9, %s410_s9 }
  0x3b   :  { %v518_v11 = vld [vmem:[#allocation7 + $0x70] ss:$8 sps:$4 sm:$0xff]   ;;  %v714_v38 = vsub.s32 0, %v164_v36  ;;  %v520_v51 = vld [vmem:[#allocation7 + $0x14] ss:$8 sps:$4 sm:$0xff]  }
  0x3c   :  { %460 = vmatmul.mubr.msk.bf16.vlgmr.msra.gmra.mrb[0].mxu0 %vm90_vm2, %v88_v2  ;;  %v138_v37 = vld [vmem:[%s754_s3] sm:$0x1]  ;;  %v139_v41 = vld [vmem:[%s754_s3 + $0x1] sm:$0x1]  ;;  %v521_v52 = vld [vmem:[#allocation7 + $0x24] ss:$8 sps:$4 sm:$0xff]  }
  0x3d   :  { %499 = vmatprep.mubr.msk.bf16.mxu0 %vm635_vm0, %v634_v0  ;;  %466 = vmatpush3.bf16.msra.mxu1 %v512_v5  ;;  %v522_v53 = vld [vmem:[#allocation7 + $0x34] ss:$8 sps:$4 sm:$0xff]   ;;  %v523_v54 = vld [vmem:[#allocation7 + $0x44] ss:$8 sps:$4 sm:$0xff]  }
  0x3e   :  { %467 = vmatprep.subr.bf16.mxu1 %v634_v0  ;;  %484 = vmatpush3.bf16.msra.mxu0 %v519_v50  ;;  %v524_v55 = vld [vmem:[#allocation7 + $0x54] ss:$8 sps:$4 sm:$0xff]   ;;  %v525_v56 = vld [vmem:[#allocation7 + $0x64] ss:$8 sps:$4 sm:$0xff]  }
  0x3f   :  { %485 = vmatprep.subr.bf16.mxu0 %v634_v0  ;;  %v526_v57 = vld [vmem:[#allocation7 + $0x74] ss:$8 sps:$4 sm:$0xff]  }
  0x41   :  { %468 = vmatpush3.bf16.msra.mxu1 %v513_v6 }
  0x42   :  { %469 = vmatprep.subr.bf16.mxu1 %v634_v0  ;;  %486 = vmatpush3.bf16.msra.mxu0 %v520_v51 }
  0x43   :  { %487 = vmatprep.subr.bf16.mxu0 %v634_v0 }
  0x45   :  { %470 = vmatpush3.bf16.msra.mxu1 %v514_v7 }
  0x46   :  { %471 = vmatprep.subr.bf16.mxu1 %v634_v0  ;;  %488 = vmatpush3.bf16.msra.mxu0 %v521_v52 }
  0x47   :  { %489 = vmatprep.subr.bf16.mxu0 %v634_v0 }
  0x49   :  { %472 = vmatpush3.bf16.msra.mxu1 %v515_v8 }
  0x4a   :  { %473 = vmatprep.subr.bf16.mxu1 %v634_v0  ;;  %490 = vmatpush3.bf16.msra.mxu0 %v522_v53 }
  0x4b   :  { %491 = vmatprep.subr.bf16.mxu0 %v634_v0 }
  0x4d   :  { %474 = vmatpush3.bf16.msra.mxu1 %v516_v9 }
  0x4e   :  { %475 = vmatprep.subr.bf16.mxu1 %v634_v0  ;;  %492 = vmatpush3.bf16.msra.mxu0 %v523_v54 }
  0x4f   :  { %493 = vmatprep.subr.bf16.mxu0 %v634_v0 }
  0x51   :  { %476 = vmatpush3.bf16.msra.mxu1 %v517_v10 }
  0x52   :  { %477 = vmatprep.subr.bf16.mxu1 %v634_v0  ;;  %494 = vmatpush3.bf16.msra.mxu0 %v524_v55 }
  0x53   :  { %495 = vmatprep.subr.bf16.mxu0 %v634_v0 }
  0x55   :  { %478 = vmatpush3.bf16.msra.mxu1 %v518_v11 }
  0x56   :  { %496 = vmatpush3.bf16.msra.mxu0 %v525_v56 }
  0x57   :  { %497 = vmatprep.subr.bf16.mxu0 %v634_v0 }
  0x5a   :  { %498 = vmatpush3.bf16.msra.mxu0 %v526_v57 }
 0x10f   :  { %v132_v12 = vpop.f32.mrb[0].mxu0 }
 0x110   :  { %v140_v13 = vrot.slane %v132_v12, 4  ;;  %v147_v14 = vmul.f32 %v132_v12, %v132_v12  ;;  %v461_v15 = vpop.f32.mrb[1].mxu0 }
 0x111   :  { %v135_v16 = vpop.f32.mrb[2].mxu0 }
 0x112   :  { %v141_v17 = vadd.f32 %v140_v13, %v132_v12  ;;  %v148_v18 = vrot.slane %v147_v14, 4  ;;  %v462_v19 = vpop.f32.mrb[3].mxu0 }
 0x114   :  { %v142_v20 = vrot.slane %v141_v17, 2  ;;  %v149_v21 = vadd.f32 %v148_v18, %v147_v14 }
 0x116   :  { %v143_v22 = vadd.f32 %v142_v20, %v141_v17  ;;  %v150_v23 = vrot.slane %v149_v21, 2  ;;  %v263_v17 = vld [vmem:[%s754_s3 + $0x2] sm:$0x1]  ;;  %v264_v20 = vld [vmem:[%s754_s3 + $0x3] sm:$0x1] }
 0x118   :  { %v144_v24 = vrot.slane %v143_v22, 1  ;;  %v151_v25 = vadd.f32 %v150_v23, %v149_v21 }
 0x11a   :  { %v145_v26 = vadd.f32 %v144_v24, %v143_v22  ;;  %v152_v27 = vrot.slane %v151_v25, 1 }
 0x11c   :  { %v146_v28 = vmul.f32 0.125, %v145_v26  ;;  %v153_v29 = vadd.f32 %v152_v27, %v151_v25 }
 0x11e   :  { %v154_v30 = vmul.f32 0.125, %v153_v29  ;;  %v155_v31 = vmul.f32 %v146_v28, %v146_v28  ;;  %v428_v29 = vld [vmem:[%s754_s3 + $0x4] ss:$0 sm:$0xff]  ;;  %s601_s3 = scalar_lea.vmem %s410_s9, 128 }
 0x11f   :  { %p602_p10 = scmp.ne.s32.totalorder %s410_s9, %s601_s3  ;;  %p607_p12 = scmp.lt.s32.totalorder %s601_s3, %s601_s3 }
 0x120   :  { %v156_v32 = vsub.f32 %v154_v30, %v155_v31 }
 0x121   :  { %p608_p13 = por %p607_p12, %p606_p11 }
 0x122   :  { %v157_v33 = vmax.f32 %v156_v32, 0.0 }
 0x123   :  { %p609_p0 = pnand %p608_p13, %p602_p10 }
 0x124   :  { %v158_v34 = vadd.f32 1e-05, %v157_v33 }
 0x126   :  { %527 = vrsqrt.f32 %v158_v34 }
 0x130   :  { %v528_v39 = vpop.eup %527 }
 0x131   :  { %v160_v40 = vmul.f32 %v528_v39, %v138_v37 }
 0x133   :  { %v166_v42 = vrot.slane %v160_v40, %v714_v38  ;;  %v161_v43 = vmul.f32 %v160_v40, %v146_v28 }
 0x135   :  { %v162_v44 = vsub.f32 %v139_v41, %v161_v43  ;;  %v167_v45 = vmul.f32 %v166_v42, %v132_v12 }
 0x137   :  { %v171_v46 = vrot.slane %v162_v44, %v714_v38 }
 0x139   :  { %v172_v47 = vadd.f32 %v171_v46, %v167_v45 }
 0x13b   :  { %v173_v48 = vmax.f32 %v172_v47, 0.0 }
 0x13d   :  { %v174_v49 = vpack.c.bf16 %v173_v48, %v173_v48 }
 0x13f   :  { %480 = vmatmul.mubr.bf16.vlgmr.msra.gmra.mrb[0].mxu1 %v174_v49 }
 0x212   :  { %v257_v58 = vpop.f32.mrb[0].mxu1 }
 0x213   :  { %v265_v59 = vrot.slane %v257_v58, 4  ;;  %v272_v60 = vmul.f32 %v257_v58, %v257_v58  ;;  %v481_v61 = vpop.f32.mrb[1].mxu1 }
 0x214   :  { %v260_v62 = vpop.f32.mrb[2].mxu1 }
 0x215   :  { %v266_v63 = vadd.f32 %v265_v59, %v257_v58  ;;  %v273_v1 = vrot.slane %v272_v60, 4  ;;  %v482_v2 = vpop.f32.mrb[3].mxu1 }
 0x217   :  { %v267_v3 = vrot.slane %v266_v63, 2  ;;  %v274_v4 = vadd.f32 %v273_v1, %v272_v60 }
 0x219   :  { %v268_v5 = vadd.f32 %v267_v3, %v266_v63  ;;  %v275_v6 = vrot.slane %v274_v4, 2 }
 0x21b   :  { %v269_v7 = vrot.slane %v268_v5, 1  ;;  %v276_v8 = vadd.f32 %v275_v6, %v274_v4 }
 0x21d   :  { %v270_v9 = vadd.f32 %v269_v7, %v268_v5  ;;  %v277_v10 = vrot.slane %v276_v8, 1 }
 0x21f   :  { %v271_v11 = vmul.f32 0.125, %v270_v9  ;;  %v278_v0 = vadd.f32 %v277_v10, %v276_v8 }
 0x221   :  { %v279_v12 = vmul.f32 0.125, %v278_v0  ;;  %v280_v13 = vmul.f32 %v271_v11, %v271_v11 }
 0x223   :  { %v281_v14 = vsub.f32 %v279_v12, %v280_v13 }
 0x225   :  { %v282_v15 = vmax.f32 %v281_v14, 0.0 }
 0x227   :  { %v283_v16 = vadd.f32 1e-05, %v282_v15 }
 0x229   :  { %529 = vrsqrt.f32 %v283_v16 }
 0x233   :  { %v530_v18 = vpop.eup %529 }
 0x234   :  { %v285_v19 = vmul.f32 %v530_v18, %v263_v17 }
 0x236   :  { %v286_v21 = vmul.f32 %v285_v19, %v271_v11  ;;  %v291_v22 = vrot.slane %v285_v19, %v714_v38 }
 0x238   :  { %v287_v23 = vsub.f32 %v264_v20, %v286_v21  ;;  %v292_v24 = vmul.f32 %v291_v22, %v257_v58 }
 0x23a   :  { %v296_v25 = vrot.slane %v287_v23, %v714_v38 }
 0x23c   :  { %v297_v26 = vadd.f32 %v296_v25, %v292_v24 }
 0x23e   :  { %v298_v27 = vmax.f32 %v297_v26, 0.0 }
 0x240   :  { %v299_v28 = vpack.c.bf16 %v298_v27, %v298_v27 }
 0x242   :  { %500 = vmatmul.mubr.bf16.vlgmr.msra.gmra.mrb[4].mxu0 %v299_v28 }
 0x315   :  { %v387_v30 = vpop.f32.mrb[4].mxu0 }
 0x316   :  { %v388_v31 = vadd.f32 %v428_v29, %v387_v30  ;;  %v501_v32 = vpop.f32.mrb[5].mxu0 }
 0x317   :  { %v390_v33 = vpop.f32.mrb[6].mxu0 }
 0x318   :  { %393 = vmax.xlane.f32.xlu0 %v388_v31  ;;  %v502_v34 = vpop.f32.mrb[7].mxu0 }
 0x3a5   :  { %v394_v35 = vpop.xlane.xlu0 %393 }
 0x3a6   :  { %v395_v36 = vsub.f32 %v388_v31, %v394_v35 }
 0x3a8   :  { %v396_v37 = vmul.f32 1.442695, %v395_v36 }
 0x3aa   :  { %531 = vpow2.f32 %v396_v37 }
 0x3b4   :  { %v532_v39 = vpop.eup %531 }
 0x3b5   :  { %398 = vadd.xlane.f32.xlu0 %v532_v39 }
 0x442   :  { %v399_v38 = vpop.xlane.xlu0 %398 }
 0x443   :  { %533 = vrcp.f32 %v399_v38 }
 0x44d   :  { %v534_v40 = vpop.eup %533 }
 0x44e   :  { %v401_v41 = vmul.f32 %v534_v40, %v532_v39 }
 0x450   :  { %402 = vst [vmem:[#allocation8] sm:$0xff] %v401_v41 }
 0x451   :  { %612 = shalt.err (!%p609_p0)
}
 0x452   :  { %s613_s11 = scalar_lea.hbm %s755_s4, 128 }
 0x453   :  { %p614_p1 = scmp.ne.s32.totalorder %s755_s4, %s613_s11  ;;  %p617_p2 = scmp.lt.u32.totalorder %s613_s11, %s755_s4 }
 0x455   :  { %p619_p3 = pnand %p617_p2, %p614_p1 }
 0x457   :  { %622 = shalt.err (!%p619_p3)
}
 0x458   :  { %412 = dma.vmem_to_hbm [thread:$0]  %s410_s9, 128, %s755_s4, [#allocation4]  }
 0x459   :  { %627 = dma.done.wait [#allocation4], 128  }
 0x45a   :  { %628 = vsyncadd [#allocation4], 4294967168 }
 0x45b   :  { %416 = vsyncpa [#allocation3], 1 }
 0x45c   :  { %417 = vsyncpa [#allocation6], 1 }
 0x45d   :  { %418 = vsyncpa [#allocation4], 1 }

</bundles_post_ra>
